<compile_context>
chip_gen: v7x
topology: tpu7x:2x2x1
jax: 0.10.0
libtpu: 0.0.40
codegen_flags: <defaults>
</compile_context>

<pallas_src>
import functools

import jax
import jax.numpy as jnp
from jax.experimental import pallas as pl
from jax.experimental.pallas import tpu as pltpu


# ---------------------------------------------------------------------------
# Sequence kernel: step the cell over a chunk of timesteps inside one grid
# step.  Weights/bias live in a single VMEM-resident slab; h is carried in
# vregs inside the chunk and in a VMEM scratch across chunks.
# ---------------------------------------------------------------------------
def _gru_seq_kernel(x_ref, h0_ref, slab_ref, o_ref, h_scratch,
                    *, input_size, hidden_size, chunk):
    I, H = input_size, hidden_size
    t_chunk = pl.program_id(1)          # time-chunk axis (sequential carry)

    @pl.when(t_chunk == 0)
    def _():
        h_scratch[...] = h0_ref[...].astype(jnp.float32)

    # --- invariant loads, hoisted above the unrolled time loop -------------
    # slab rows: [0, I)        -> [W_ih.T | Wx.T]          (x multiplicand)
    #            [I, I+H)      -> [W_hh.T | 0    ]          (h multiplicand)
    #            [I+H, I+2H)   -> [Wh.T   | 0    ]          (candidate)
    #            [I+2H]        -> [b_ih+b_hh | 0 ]          (bias row)
    w_top = slab_ref[:I, :]                                   # (I, 3H)
    w_bot = slab_ref[I:I + H, :]                              # (H, 3H)
    w_ht = slab_ref[I + H:I + 2 * H, :H]                      # (H, H)  == Wh.T
    bb = x_ref.shape[1]                                       # batch block
    bias = jnp.broadcast_to(slab_ref[I + 2 * H:I + 2 * H + 1, :], (bb, 3 * H))

    def step(t, h):
        x = x_ref[t].astype(jnp.float32)                      # (Bb, I)
        fused = (jnp.dot(x, w_top, preferred_element_type=jnp.float32)
                 + jnp.dot(h, w_bot, preferred_element_type=jnp.float32)
                 + bias)                                      # (Bb, 3H)
        z = jax.nn.sigmoid(fused[:, :H])                      # update gate
        r = jax.nn.sigmoid(fused[:, H:2 * H])                 # reset gate
        h_hat = jnp.tanh(
            fused[:, 2 * H:]
            + jnp.dot(r * h, w_ht, preferred_element_type=jnp.float32))
        h_new = (1.0 - z) * h + z * h_hat
        o_ref[t] = h_new.astype(o_ref.dtype)                  # VMEM store; one
        return h_new                                          # HBM DMA / chunk

    h_final = jax.lax.fori_loop(0, chunk, step, h_scratch[...], unroll=True)
    h_scratch[...] = h_final                                  # carry to next chunk


def gru_sequence_forward(x_seq, h0, packed, *, time_chunk=None, batch_block=None):
    """Run the GRU cell over a (T, B, I) sequence; returns all hidden states (T, B, H)."""
    T, B, I = x_seq.shape
    _, H = h0.shape
    slab = packed["slab"]
    R = slab.shape[0]                     # I + 2H + 1

    if time_chunk is None:
        # Whole sequence in one block when short; otherwise a divisor chunk.
        time_chunk = T if T <= 32 else next(
            c for c in (32, 16, 8, 4, 2, 1) if T % c == 0)
    assert T % time_chunk == 0
    if batch_block is None:
        batch_block = B                   # full batch per block (demo sizes)
    assert B % batch_block == 0
    assert batch_block == B or batch_block % 8 == 0, \
        "sub-batch blocks must keep the sublane multiple-of-8 constraint"

    kernel = functools.partial(_gru_seq_kernel, input_size=I, hidden_size=H,
                               chunk=time_chunk)

    return pl.pallas_call(
        kernel,
        out_shape=jax.ShapeDtypeStruct((T, B, H), x_seq.dtype),
        grid=(B // batch_block, T // time_chunk),
        in_specs=[
            # x streamed one time-chunk (and one batch block) at a time.
            pl.BlockSpec((time_chunk, batch_block, I), lambda b, t: (t, b, 0)),
            # h0 (read only at t_chunk == 0).
            pl.BlockSpec((batch_block, H), lambda b, t: (b, 0)),
            # Packed parameter slab: constant index_map -> DMA'd once, resident.
            pl.BlockSpec((R, 3 * H), lambda b, t: (0, 0)),
        ],
        out_specs=pl.BlockSpec((time_chunk, batch_block, H),
                               lambda b, t: (t, b, 0)),
        scratch_shapes=[pltpu.VMEM((batch_block, H), jnp.float32)],
        compiler_params=pltpu.CompilerParams(
            # batch blocks are independent (shards across v7x's 2 TCs);
            # the time axis carries state -> arbitrary.
            dimension_semantics=("parallel", "arbitrary")),
    )(x_seq, h0, slab)


def gru_cell_forward(xt, h_prevt, packed):
    """One GRU cell step (the module's forward()), routed through the sequence
    kernel with T=1 to share its low-overhead single-slab path."""
    return gru_sequence_forward(xt[None], h_prevt, packed)[0]


# ---------------------------------------------------------------------------
# Parameter construction & one-time packing.
# ---------------------------------------------------------------------------
def init_params(key, input_size, hidden_size):
    """Deterministic synthetic parameters matching the module's __init__ shapes."""
    ks = jax.random.split(key, 6)
    k_lin_i = 1.0 / jnp.sqrt(input_size)
    k_lin_h = 1.0 / jnp.sqrt(hidden_size)
    return {
        # nn.Parameter(torch.randn(...))
        "Wx": jax.random.normal(ks[0], (input_size, hidden_size), jnp.float32),
        "Wh": jax.random.normal(ks[1], (hidden_size, hidden_size), jnp.float32),
        # nn.Linear(input_size, 2H)  (weight: (2H, I), bias: (2H,))
        "W_ih": jax.random.uniform(ks[2], (2 * hidden_size, input_size),
                                   jnp.float32, -k_lin_i, k_lin_i),
        "b_ih": jax.random.uniform(ks[3], (2 * hidden_size,),
                                   jnp.float32, -k_lin_i, k_lin_i),
        # nn.Linear(hidden_size, 2H) (weight: (2H, H), bias: (2H,))
        "W_hh": jax.random.uniform(ks[4], (2 * hidden_size, hidden_size),
                                   jnp.float32, -k_lin_h, k_lin_h),
        "b_hh": jax.random.uniform(ks[5], (2 * hidden_size,),
                                   jnp.float32, -k_lin_h, k_lin_h),
    }


def pack_params(params):
    """One-time packing: transposes, matmul fusion, bias fold, single HBM slab."""
    I, H = params["Wx"].shape
    assert I == H, ("F.linear(xt, Wx) in the reference module requires "
                    "input_size == hidden_size")
    zcol = jnp.zeros((H, H), jnp.float32)
    w_top = jnp.concatenate([params["W_ih"].T, params["Wx"].T], axis=1)   # (I, 3H)
    w_bot = jnp.concatenate([params["W_hh"].T, zcol], axis=1)             # (H, 3H)
    w_ht = jnp.concatenate([params["Wh"].T, zcol, zcol], axis=1)          # (H, 3H)
    bias = jnp.concatenate(
        [params["b_ih"] + params["b_hh"], jnp.zeros((H,), jnp.float32)]
    ).reshape(1, 3 * H)                                                   # (1, 3H)
    slab = jnp.concatenate([w_top, w_bot, w_ht, bias], axis=0)            # (I+2H+1, 3H)
    # TODO(synk): if H scales into the hundreds, tile the 3H axis / store the
    # slab in bf16 and set vmem_limit_bytes (v7x has only 64 MiB VMEM).
    return {"slab": jax.device_put(slab)}


# ---------------------------------------------------------------------------
# Pure-JAX references for validation.
# ---------------------------------------------------------------------------
def gru_cell_reference(xt, h_prevt, p):
    gates = xt @ p["W_ih"].T + p["b_ih"] + h_prevt @ p["W_hh"].T + p["b_hh"]
    H = h_prevt.shape[-1]
    z = jax.nn.sigmoid(gates[:, :H])
    r = jax.nn.sigmoid(gates[:, H:])
    h_hat = jnp.tanh(xt @ p["Wx"].T + (r * h_prevt) @ p["Wh"].T)
    return (1.0 - z) * h_prevt + z * h_hat


def gru_sequence_reference(x_seq, h0, p):
    def step(h, x):
        h_new = gru_cell_reference(x, h, p)
        return h_new, h_new
    _, hs = jax.lax.scan(step, h0, x_seq)
    return hs


if __name__ == "__main__":
    batch = 2
    input_size = 32   # must equal hidden_size for F.linear(xt, Wx) to be valid
    hidden_size = 32
    seq_len = 8

    key = jax.random.PRNGKey(0)
    k_x, k_h, k_p, k_xs = jax.random.split(key, 4)
    xt = jax.random.normal(k_x, (batch, input_size), jnp.float32)
    h_prevt = jax.random.normal(k_h, (batch, hidden_size), jnp.float32)
    params = init_params(k_p, input_size, hidden_size)
    packed = pack_params(params)   # one-time packing (not per call)

    # Single-step (the module's forward()), via the sequence kernel with T=1.
    ht = gru_cell_forward(xt, h_prevt, packed)
    ht = jax.block_until_ready(ht)
    ht_ref = gru_cell_reference(xt, h_prevt, params)
    assert ht.shape == (batch, hidden_size)
    assert jnp.allclose(ht, ht_ref, atol=1e-5, rtol=1e-5)

    # Fused sequence kernel: whole T=8 sequence in one grid step, time loop
    # unrolled inside the kernel.
    x_seq = jax.random.normal(k_xs, (seq_len, batch, input_size), jnp.float32)
    hs = gru_sequence_forward(x_seq, h_prevt, packed)
    hs = jax.block_until_ready(hs)
    hs_ref = gru_sequence_reference(x_seq, h_prevt, params)
    assert hs.shape == (seq_len, batch, hidden_size)
    assert jnp.allclose(hs, hs_ref, atol=1e-4, rtol=1e-4)

    print("KERNEL_OK")
</pallas_src>

<mosaic_0001>
module attributes {stable_mosaic.version = 11 : i64} {
  func.func @_gru_seq_kernel(%arg0: i32, %arg1: i32, %arg2: memref<1x2x32xf32, #tpu.memory_space<vmem>>, %arg3: memref<2x32xf32, #tpu.memory_space<vmem>>, %arg4: memref<97x96xf32, #tpu.memory_space<vmem>>, %arg5: memref<1x2x32xf32, #tpu.memory_space<vmem>>, %arg6: memref<2x32xf32, #tpu.memory_space<vmem>>) attributes {dimension_semantics = [#tpu.dimension_semantics<parallel>, #tpu.dimension_semantics<arbitrary>], iteration_bounds = array<i64: 1, 1>, scalar_prefetch = 0 : i64, scratch_operands = 1 : i64, tpu.core_type = #tpu.core_type<tc>, window_params = [{transform_indices = @transform_0, window_bounds = array<i64: 1, 2, 32>}, {transform_indices = @transform_1, window_bounds = array<i64: 2, 32>}, {pipeline_mode = #tpu.pipeline_mode<synchronous>, transform_indices = @transform_2, window_bounds = array<i64: 97, 96>}, {transform_indices = @transform_3, window_bounds = array<i64: 1, 2, 32>}]} {
    %c0_i32 = arith.constant 0 : i32
    %0 = arith.cmpi eq, %arg1, %c0_i32 : i32
    %1 = arith.extui %0 : i1 to i32
    %c0_i32_0 = arith.constant 0 : i32
    %2 = arith.cmpi ne, %1, %c0_i32_0 : i32
    scf.if %2 {
      %c0_19 = arith.constant 0 : index
      %c0_20 = arith.constant 0 : index
      %44 = vector.load %arg3[%c0_19, %c0_20] : memref<2x32xf32, #tpu.memory_space<vmem>>, vector<2x32xf32>
      %c0_21 = arith.constant 0 : index
      %c0_22 = arith.constant 0 : index
      %45 = vector.load %arg6[%c0_21, %c0_22] : memref<2x32xf32, #tpu.memory_space<vmem>>, vector<2x32xf32>
      tpu.vector_store %arg6[%c0_21, %c0_22], %44 {strides = array<i32>} : memref<2x32xf32, #tpu.memory_space<vmem>>, vector<2x32xf32>,
    } else {
    }
    %c0 = arith.constant 0 : index
    %c0_1 = arith.constant 0 : index
    %3 = vector.load %arg4[%c0, %c0_1] : memref<97x96xf32, #tpu.memory_space<vmem>>, vector<32x96xf32>
    %c32 = arith.constant 32 : index
    %c0_2 = arith.constant 0 : index
    %4 = vector.load %arg4[%c32, %c0_2] : memref<97x96xf32, #tpu.memory_space<vmem>>, vector<32x96xf32>
    %c64 = arith.constant 64 : index
    %c0_3 = arith.constant 0 : index
    %5 = vector.load %arg4[%c64, %c0_3] : memref<97x96xf32, #tpu.memory_space<vmem>>, vector<32x32xf32>
    %c96 = arith.constant 96 : index
    %c0_4 = arith.constant 0 : index
    %6 = vector.load %arg4[%c96, %c0_4] : memref<97x96xf32, #tpu.memory_space<vmem>>, vector<1x96xf32>
    %7 = vector.shape_cast %6 : vector<1x96xf32> to vector<1x96xf32>
    %8 = vector.broadcast %7 : vector<1x96xf32> to vector<2x96xf32>
    %c0_5 = arith.constant 0 : index
    %c0_6 = arith.constant 0 : index
    %9 = vector.load %arg6[%c0_5, %c0_6] : memref<2x32xf32, #tpu.memory_space<vmem>>, vector<2x32xf32>
    %c0_i32_7 = arith.constant 0 : i32
    %10 = arith.index_cast %c0_i32_7 : i32 to index
    %c0_8 = arith.constant 0 : index
    %c0_9 = arith.constant 0 : index
    %11 = vector.load %arg2[%10, %c0_8, %c0_9] : memref<1x2x32xf32, #tpu.memory_space<vmem>>, vector<1x2x32xf32>
    %12 = vector.shape_cast %11 : vector<1x2x32xf32> to vector<2x32xf32>
    %cst = arith.constant dense<0.000000e+00> : vector<2x96xf32>
    %13 = tpu.matmul %12, %3, %cst {dimension_numbers = #tpu.dot_dimension_numbers<[1], [0], [0], [1], [0, 0, 1, 1], [], []>} : vector<2x32xf32>, vector<32x96xf32>, vector<2x96xf32> -> vector<2x96xf32>
    %cst_10 = arith.constant dense<0.000000e+00> : vector<2x96xf32>
    %14 = tpu.matmul %9, %4, %cst_10 {dimension_numbers = #tpu.dot_dimension_numbers<[1], [0], [0], [1], [0, 0, 1, 1], [], []>} : vector<2x32xf32>, vector<32x96xf32>, vector<2x96xf32> -> vector<2x96xf32>
    %15 = arith.addf %13, %14 : vector<2x96xf32>
    %16 = arith.addf %15, %8 : vector<2x96xf32>
    %17 = vector.extract_strided_slice %16 {offsets = [0, 0], sizes = [2, 32], strides = [1, 1]} : vector<2x96xf32> to vector<2x32xf32>
    %18 = arith.negf %17 : vector<2x32xf32>
    %19 = math.exp %18 : vector<2x32xf32>
    %cst_11 = arith.constant 1.000000e+00 : f32
    %20 = vector.broadcast %cst_11 : f32 to vector<2x32xf32>
    %21 = arith.addf %20, %19 : vector<2x32xf32>
    %22 = arith.divf %20, %21 : vector<2x32xf32>
    %23 = vector.extract_strided_slice %16 {offsets = [0, 32], sizes = [2, 32], strides = [1, 1]} : vector<2x96xf32> to vector<2x32xf32>
    %24 = arith.negf %23 : vector<2x32xf32>
    %25 = math.exp %24 : vector<2x32xf32>
    %cst_12 = arith.constant 1.000000e+00 : f32
    %26 = vector.broadcast %cst_12 : f32 to vector<2x32xf32>
    %27 = arith.addf %26, %25 : vector<2x32xf32>
    %28 = arith.divf %26, %27 : vector<2x32xf32>
    %29 = vector.extract_strided_slice %16 {offsets = [0, 64], sizes = [2, 32], strides = [1, 1]} : vector<2x96xf32> to vector<2x32xf32>
    %30 = arith.mulf %28, %9 : vector<2x32xf32>
    %cst_13 = arith.constant dense<0.000000e+00> : vector<2x32xf32>
    %31 = tpu.matmul %30, %5, %cst_13 {dimension_numbers = #tpu.dot_dimension_numbers<[1], [0], [0], [1], [0, 0, 1, 1], [], []>} : vector<2x32xf32>, vector<32x32xf32>, vector<2x32xf32> -> vector<2x32xf32>
    %32 = arith.addf %29, %31 : vector<2x32xf32>
    %33 = math.tanh %32 : vector<2x32xf32>
    %cst_14 = arith.constant 1.000000e+00 : f32
    %34 = vector.broadcast %cst_14 : f32 to vector<2x32xf32>
    %35 = arith.subf %34, %22 : vector<2x32xf32>
    %36 = arith.mulf %35, %9 : vector<2x32xf32>
    %37 = arith.mulf %22, %33 : vector<2x32xf32>
    %38 = arith.addf %36, %37 : vector<2x32xf32>
    %39 = arith.index_cast %c0_i32_7 : i32 to index
    %c0_15 = arith.constant 0 : index
    %c0_16 = arith.constant 0 : index
    %40 = vector.load %arg5[%39, %c0_15, %c0_16] : memref<1x2x32xf32, #tpu.memory_space<vmem>>, vector<1x2x32xf32>
    %41 = vector.shape_cast %40 : vector<1x2x32xf32> to vector<2x32xf32>
    %42 = vector.shape_cast %38 : vector<2x32xf32> to vector<1x2x32xf32>
    tpu.vector_store %arg5[%39, %c0_15, %c0_16], %42 {strides = array<i32>} : memref<1x2x32xf32, #tpu.memory_space<vmem>>, vector<1x2x32xf32>,
    %c1_i32 = arith.constant 1 : i32
    %c0_17 = arith.constant 0 : index
    %c0_18 = arith.constant 0 : index
    %43 = vector.load %arg6[%c0_17, %c0_18] : memref<2x32xf32, #tpu.memory_space<vmem>>, vector<2x32xf32>
    tpu.vector_store %arg6[%c0_17, %c0_18], %38 {strides = array<i32>} : memref<2x32xf32, #tpu.memory_space<vmem>>, vector<2x32xf32>,
    return
  }
  func.func @transform_0(%arg0: i32, %arg1: i32) -> (i32, i32, i32) {
    %c0_i32 = arith.constant 0 : i32
    %c0_i32_0 = arith.constant 0 : i32
    return %arg1, %arg0, %c0_i32 : i32, i32, i32
  }
  func.func @transform_1(%arg0: i32, %arg1: i32) -> (i32, i32) {
    %c0_i32 = arith.constant 0 : i32
    %c0_i32_0 = arith.constant 0 : i32
    return %arg0, %c0_i32 : i32, i32
  }
  func.func @transform_2(%arg0: i32, %arg1: i32) -> (i32, i32) {
    %c0_i32 = arith.constant 0 : i32
    %c0_i32_0 = arith.constant 0 : i32
    %c0_i32_1 = arith.constant 0 : i32
    return %c0_i32, %c0_i32_0 : i32, i32
  }
  func.func @transform_3(%arg0: i32, %arg1: i32) -> (i32, i32, i32) {
    %c0_i32 = arith.constant 0 : i32
    %c0_i32_0 = arith.constant 0 : i32
    return %arg1, %arg0, %c0_i32 : i32, i32, i32
  }
}

</mosaic_0001>

<bundles_post_ra>
// kernel: tpu_custom_call.1
= control target key start
LH: loop header
LB: loop body
LE: loop exit
PB: predicated region body
PF: predicated region fallthrough
CT: control target
= control target key end

     0   :  { %v413_v3 = vmov 0.0|0.0   ;;  %vm20_vm0 = vcmask 254976   ;;  %vm414_vm1 = vmmov 0   ;;  %v415_v11 = vmov 0.0   ;;  %s506_s0 = inlined_call_operand.vmem [shape: f32[1,2,32], index: 0, kind: input, shape index: {}]   ;;  %s507_s1 = inlined_call_operand.vmem [shape: f32[2,32], index: 1, kind: input, shape index: {}]   ;;  %s508_s2 = inlined_call_operand.vmem [shape: f32[97,96], index: 2, kind: input, shape index: {}]   ;;  %s509_s3 = inlined_call_operand.hbm [shape: f32[1,2,32], index: 3, kind: output, shape index: {}]  }
   0x1   :  { %v26_v0 = vld [vmem:[%s508_s2 + $0x20] sm:$0xff]  ;;  %v27_v1 = vld [vmem:[%s508_s2 + $0x28] sm:$0xff]  ;;  %358 = vmatprep.subr.bf16.mxu0 %v413_v3  ;;  %364 = vmatprep.subr.bf16.mxu1 %v413_v3  ;;  %v28_v6 = vld [vmem:[%s508_s2 + $0x30] sm:$0xff] }
   0x2   :  { %v22_v2 = vld [vmem:[%s508_s2] sm:$0xff]  ;;  %v359_v4 = vpack.c.bf16 %v27_v1, %v26_v0  ;;  %v23_v5 = vld [vmem:[%s508_s2 + $0x8] sm:$0xff]  ;;  %v29_v7 = vld [vmem:[%s508_s2 + $0x38] sm:$0xff]  ;;  %333 = vmatprep.mubr.msk.f32.mxu0 %vm414_vm1, %v415_v11  ;;  %344 = vmatprep.mubr.msk.f32.mxu1 %vm414_vm1, %v415_v11 }
   0x3   :  { %v365_v8 = vpack.c.bf16 %v23_v5, %v22_v2  ;;  %v24_v9 = vld [vmem:[%s508_s2 + $0x10] sm:$0xff]  ;;  %v25_v10 = vld [vmem:[%s508_s2 + $0x18] sm:$0xff]  ;;  %v19_v12 = vld [vmem:[%s507_s1] sm:$0x3]  ;;  %v362_v13 = vpack.c.bf16 %v29_v7, %v28_v6 }
   0x4   :  { %360 = vmatpush3.bf16.msra.mxu0 %v359_v4  ;;  %21 = vst.msk [vmem:[#allocation2] sm:$0x3] %vm20_vm0, %v19_v12 }
   0x5   :  { %8 = vsyncpa [#allocation4], 0  ;;  %366 = vmatpush3.bf16.msra.mxu1 %v365_v8  ;;  %361 = vmatprep.subr.bf16.mxu0 %v413_v3  ;;  %v368_v14 = vpack.c.bf16 %v25_v10, %v24_v9  ;;  %vm41_vm2 = vcmask 261120   ;;  %v40_v15 = vld [vmem:[%s506_s0] sm:$0x3]  ;;  %s416_s1 = smov 32  }
   0x6   :  { %367 = vmatprep.subr.bf16.mxu1 %v413_v3  ;;  %v30_v17 = vld [vmem:[%s508_s2 + $0x40] sm:$0xff]  ;;  %v31_v18 = vld [vmem:[%s508_s2 + $0x48] sm:$0xff]  ;;  %v32_v19 = vld [vmem:[%s508_s2 + $0x50] sm:$0xff]  ;;  %s417_s14 = smov 96   ;;  %s419_s15 = smov [#allocation3]  }
   0x7   :  { %v371_v20 = vpack.c.bf16 %v31_v18, %v30_v17  ;;  %v33_v21 = vld [vmem:[%s508_s2 + $0x58] sm:$0xff]  ;;  %v305_v24 = vld [vmem:[%s508_s2 + $0x60] ss:$0 sm:$0xff]  ;;  %s418_s2 = smov 64   ;;  %s297_s16 = sshll.u32 %s419_s15, 4  ;;  %s298_s16 = int_to_ptr.vmem [resolvable:$true] %s297_s16 }
   0x8   :  { %363 = vmatpush3.bf16.msra.mxu0 %v362_v13  ;;  %v374_v22 = vpack.c.bf16 %v33_v21, %v32_v19  ;;  %s389_s17 = scalar_lea.vmem %s298_s16, 32  ;;  %p394_p1 = scmp.lt.s32.totalorder %s298_s16, %s298_s16 }
   0x9   :  { %369 = vmatpush3.bf16.msra.mxu1 %v368_v14  ;;  %370 = vmatprep.subr.bf16.mxu0 %v413_v3  ;;  %p390_p0 = scmp.ne.s32.totalorder %s298_s16, %s389_s17  ;;  %p395_p2 = scmp.lt.s32.totalorder %s389_s17, %s389_s17 }
   0xb   :  { %v39_v16 = vld [vmem:[#allocation2] sm:$0x3]  ;;  %p396_p3 = por %p395_p2, %p394_p1 }
   0xc   :  { %334 = vmatmul.mubr.msk.f32.vlgmr.msra.gmra.mrb[0].mxu0 %vm41_vm2, %v39_v16  ;;  %345 = vmatmul.mubr.msk.f32.vlgmr.msra.gmra.mrb[0].mxu1 %vm41_vm2, %v40_v15 }
   0xd   :  { %195 = vrot.lane.b32.xlu0 %v39_v16, %s416_s1  ;;  %355 = vmatprep.mubr.msk.f32.mxu0 %vm414_vm1, %v415_v11  ;;  %p397_p4 = pnand %p396_p3, %p390_p0 }
   0xe   :  { %372 = vmatpush3.bf16.msra.mxu0 %v371_v20 }
   0xf   :  { %373 = vmatprep.subr.bf16.mxu0 %v413_v3 }
  0x12   :  { %375 = vmatpush3.bf16.msra.mxu0 %v374_v22 }
  0x7f   :  { %v196_v33 = vpop.permute.xlu0 %195 }
  0xdf   :  { %v111_v23 = vpop.f32.mrb[0].mxu0  ;;  %v184_v25 = vpop.f32.mrb[0].mxu1 }
  0xe0   :  { %v185_v26 = vadd.f32 %v184_v25, %v111_v23  ;;  %v335_v27 = vpop.f32.mrb[1].mxu0  ;;  %v346_v28 = vpop.f32.mrb[1].mxu1 }
  0xe2   :  { %v188_v29 = vadd.f32 %v305_v24, %v185_v26 }
  0xe4   :  { %v308_v30 = vmul.f32 -1.442695, %v188_v29 }
  0xe6   :  { %383 = vpow2.f32 %v308_v30 }
  0xf0   :  { %v384_v31 = vpop.eup %383 }
  0xf1   :  { %v192_v32 = vadd.f32 1.0, %v384_v31 }
  0xf3   :  { %385 = vrcp.f32 %v192_v32 }
  0xfd   :  { %v386_v34 = vpop.eup %385 }
  0xfe   :  { %v198_v35 = vmul.f32 %v386_v34, %v196_v33  ;;  %v280_v42 = vsub.f32 1.0, %v386_v34 }
 0x100   :  { %200 = vrot.lane.b32.xlu0 %v198_v35, %s417_s14  ;;  %v281_v44 = vmul.f32 %v280_v42, %v39_v16 }
 0x172   :  { %v201_v36 = vpop.permute.xlu0 %200 }
 0x173   :  { %356 = vmatmul.mubr.msk.f32.vlgmr.msra.gmra.mrb[2].mxu0 %vm41_vm2, %v201_v36 }
 0x246   :  { %v270_v37 = vpop.f32.mrb[2].mxu0 }
 0x247   :  { %275 = vrot.lane.b32.xlu1 %v270_v37, %s418_s2  ;;  %v357_v38 = vpop.f32.mrb[3].mxu0 }
 0x2b9   :  { %v276_v39 = vpop.permute.xlu1 %275 }
 0x2ba   :  { %v278_v40 = vadd.f32 %v276_v39, %v188_v29 }
 0x2bc   :  { %387 = vtanh.f32 %v278_v40 }
 0x2c6   :  { %v388_v41 = vpop.eup %387 }
 0x2c7   :  { %283 = vrot.lane.b32.xlu1 %v388_v41, %s418_s2 }
 0x339   :  { %v284_v43 = vpop.permute.xlu1 %283 }
 0x33a   :  { %v286_v45 = vmul.f32 %v386_v34, %v284_v43 }
 0x33c   :  { %v287_v46 = vadd.f32 %v286_v45, %v281_v44 }
 0x33e   :  { %290 = vst.msk [vmem:[#allocation2] sm:$0x3] %vm20_vm0, %v287_v46  ;;  %289 = vst.msk [vmem:[#allocation3] sm:$0x3] %vm20_vm0, %v287_v46 }
 0x33f   :  { %400 = shalt.err (!%p397_p4)
}
 0x340   :  { %s401_s20 = scalar_lea.hbm %s509_s3, 32 }
 0x341   :  { %p402_p5 = scmp.ne.s32.totalorder %s509_s3, %s401_s20  ;;  %p405_p6 = scmp.lt.u32.totalorder %s401_s20, %s509_s3 }
 0x343   :  { %p407_p7 = pnand %p405_p6, %p402_p5 }
 0x345   :  { %410 = shalt.err (!%p407_p7)
}
 0x346   :  { %300 = dma.vmem_to_hbm [thread:$0]  %s298_s16, 32, %s509_s3, [#allocation4]  }
 0x347   :  { %411 = dma.done.wait [#allocation4], 32  }
 0x348   :  { %412 = vsyncadd [#allocation4], 4294967264 }
 0x349   :  { %304 = vsyncpa [#allocation4], 1 }

</bundles_post_ra>
